<compile_context>
chip_gen: v7x
topology: tpu7x:2x2x1
jax: 0.10.0
libtpu: 0.0.40
codegen_flags: <defaults>
</compile_context>

<pallas_src>
import jax
import jax.numpy as jnp
from jax import lax
from jax.experimental import pallas as pl
from jax.experimental.pallas import tpu as pltpu

EPSILON = 1e-6


# ----------------------------------------------------------------------------
# JAX helpers mirroring the PyTorch functional pieces (geometry + sampling)
# ----------------------------------------------------------------------------
def _perspective(matrix, vector):
    """matrix: (..., 3, 4), vector: (..., 3) -> (..., 2) image coordinates."""
    hom = jnp.matmul(matrix[..., :3], vector[..., None]) + matrix[..., 3:4]
    hom = hom[..., 0]
    return hom[..., :2] / hom[..., 2:3]


def _grid_sample_bilinear(img, grid):
    """F.grid_sample(img, grid, mode='bilinear', padding_mode='zeros',
    align_corners=False).  img: (B,C,H,W), grid: (B,Hg,Wg,2) with (x, y)."""
    B, C, H, W = img.shape
    x = (grid[..., 0] + 1.0) * (W * 0.5) - 0.5
    y = (grid[..., 1] + 1.0) * (H * 0.5) - 0.5
    x0 = jnp.floor(x)
    y0 = jnp.floor(y)
    wx1 = x - x0
    wy1 = y - y0
    wx0 = 1.0 - wx1
    wy0 = 1.0 - wy1

    def gather(xf, yf):
        valid = (xf >= 0) & (xf <= W - 1) & (yf >= 0) & (yf <= H - 1)
        xi = jnp.clip(xf, 0, W - 1).astype(jnp.int32)
        yi = jnp.clip(yf, 0, H - 1).astype(jnp.int32)
        v = jax.vmap(lambda im, yy, xx: im[:, yy, xx])(img, yi, xi)  # (B,C,Hg,Wg)
        return v * valid[:, None].astype(img.dtype)

    return (gather(x0, y0) * (wx0 * wy0)[:, None]
            + gather(x0 + 1.0, y0) * (wx1 * wy0)[:, None]
            + gather(x0, y0 + 1.0) * (wx0 * wy1)[:, None]
            + gather(x0 + 1.0, y0 + 1.0) * (wx1 * wy1)[:, None])


def _oft_geometry(features, calib, corners_radar, scale):
    """Projection, bbox corners, area/visibility and the four integral-image
    samples.  Returns tl/br/tr/bl (B,C,Hn,P), area/visible (B,1,Hn,P), dims."""
    B, C, H, W = features.shape
    corners = jnp.broadcast_to(corners_radar, (B,) + corners_radar.shape[1:])
    img_corners = _perspective(calib.reshape(B, 1, 1, 1, 3, 4), corners)
    img_size = jnp.asarray([W, H], dtype=features.dtype) / scale
    norm_corners = jnp.clip(2.0 * img_corners / img_size - 1.0, -1.0, 1.0)

    bbox = jnp.concatenate(
        [jnp.minimum(norm_corners[:, :-1, :-1, :-1], norm_corners[:, :-1, 1:, :-1]),
         jnp.maximum(norm_corners[:, 1:, 1:, 1:], norm_corners[:, 1:, :-1, 1:])],
        axis=-1)                                    # (B, Hn, depth, width, 4)
    _, Hn, depth, width, _ = bbox.shape
    P = depth * width
    bbox = bbox.reshape(B, Hn, P, 4)

    area = ((bbox[..., 2] - bbox[..., 0]) * (bbox[..., 3] - bbox[..., 1])
            * (H * W * 0.25) + EPSILON)             # (B, Hn, P)
    visible = (area > EPSILON).astype(features.dtype)

    # TODO(synk): the integral image (2-D cumsum) and the four bilinear
    # grid_sample gathers are left to XLA; a Pallas version would need a manual
    # DMA gather with data-dependent indices.
    integral = jnp.cumsum(jnp.cumsum(features, axis=-1), axis=-2)
    tl = _grid_sample_bilinear(integral, bbox[..., jnp.array([0, 1])])
    br = _grid_sample_bilinear(integral, bbox[..., jnp.array([2, 3])])
    tr = _grid_sample_bilinear(integral, bbox[..., jnp.array([2, 1])])
    bl = _grid_sample_bilinear(integral, bbox[..., jnp.array([0, 3])])
    # each: (B, C, Hn, P)

    return tl, br, tr, bl, area[:, None], visible[:, None], (B, C, Hn, depth, width)


def _prepare_boxes(tl, br, tr, bl, area, visible):
    """Fold visible/area into the sampled tensors (removes a whole HBM stream)
    and stack them into one (4, M=B*P, K=C*Hn) buffer: rows match the PyTorch
    permute(0,3,1,2).flatten layout (k = c*Hn + h), samples ordered
    [tl, tr, br, bl] for the better-conditioned (tl - tr) + (br - bl) combine."""
    B, C, Hn, P = tl.shape
    s = visible / area                                       # (B,1,Hn,P), f32
    boxes = jnp.stack([tl * s, tr * s, br * s, bl * s])      # (4,B,C,Hn,P)
    boxes = jnp.transpose(boxes, (0, 1, 4, 2, 3)).reshape(4, B * P, C * Hn)
    return boxes


# ----------------------------------------------------------------------------
# Pallas kernel: fused box-combine + Linear + ReLU (streaming GEMM epilogue)
# ----------------------------------------------------------------------------
def _vox_project_kernel(box_ref, w_ref, b_ref, o_ref):
    # box_ref: (4, TM, K) pre-scaled integral samples [tl, tr, br, bl]
    # w_ref:   (K, Cout_pad)    b_ref: (1, Cout_pad) lane-major bias
    # Combine stays in f32 (cancellation-prone cumsum values), grouped as
    # (tl - tr) + (br - bl) for better conditioning.
    vox = (box_ref[0] - box_ref[1]) + (box_ref[2] - box_ref[3])
    z = jnp.dot(vox, w_ref[...], precision=lax.Precision.HIGHEST,
                preferred_element_type=jnp.float32)
    o_ref[...] = jnp.maximum(z + b_ref[...], 0.0).astype(o_ref.dtype)


def _vmem_budget_bytes():
    """VMEM footprint budget, derived per generation (v7x: 64 MiB physical ->
    ~48 MiB budget; v5e/v6e: 128 MiB physical -> 96 MiB budget)."""
    try:
        cap = int(pltpu.get_tpu_info().vmem_capacity_bytes)
    except Exception:
        cap = 64 * 1024 * 1024          # conservative (v7x per-core VMEM)
    return int(min(max(cap - 16 * 1024 * 1024, 32 * 1024 * 1024),
                   96 * 1024 * 1024))


def _choose_tm(M, K, Cout_pad, vmem_budget):
    """Rows per grid step for the streaming kernel."""
    per_row = (4 * K + Cout_pad) * 4                 # streamed f32 bytes / row
    resident = 2 * (K * Cout_pad + Cout_pad) * 4     # weight + bias, x2 buffers
    # ~8 MiB of streamed operands per step (~16 MiB double-buffered), and at
    # least 512 rows whenever K allows -> HBM-roofline plateau.
    tm = max(512, (8 * 1024 * 1024) // per_row)
    # Never exceed the VMEM budget (double-buffered streams + resident weight).
    tm = min(tm, max(8, (vmem_budget - resident) // (2 * per_row)))
    tm = min(tm, 2048)
    # Megacore: always >= 2 grid steps (v7x has 2 TensorCores), up to 8 steps
    # as long as each step keeps >= 512 rows — don't trade tile size for steps.
    steps = max(2, min(8, M // 512))
    tm = min(tm, -(-M // steps))
    if M <= 8:
        return M
    return max(8, (min(tm, M) // 8) * 8)


def _vox_project_pallas(boxes, w_t, b_row):
    _, M, K = boxes.shape
    Cout_pad = w_t.shape[1]
    vmem_budget = _vmem_budget_bytes()
    TM = _choose_tm(M, K, Cout_pad, vmem_budget)
    grid = (pl.cdiv(M, TM),)

    return pl.pallas_call(
        _vox_project_kernel,
        out_shape=jax.ShapeDtypeStruct((M, Cout_pad), boxes.dtype),
        grid_spec=pltpu.PrefetchScalarGridSpec(
            num_scalar_prefetch=0,
            grid=grid,
            in_specs=[pl.BlockSpec((4, TM, K), lambda i: (0, i, 0)),
                      pl.BlockSpec((K, Cout_pad), lambda i: (0, 0)),
                      pl.BlockSpec((1, Cout_pad), lambda i: (0, 0))],
            out_specs=pl.BlockSpec((TM, Cout_pad), lambda i: (i, 0)),
        ),
        compiler_params=pltpu.CompilerParams(
            dimension_semantics=("parallel",),
            vmem_limit_bytes=int(vmem_budget),
        ),
    )(boxes, w_t, b_row)


def _pad_lanes(w_t, bias, lane=128):
    """Zero-pad the output-channel axis to a lane multiple so the MXU RHS and
    the output tile are lane-dense (unmasked vst); padded columns are sliced
    off after the kernel."""
    K, Cout = w_t.shape
    Cout_pad = -(-Cout // lane) * lane
    if Cout_pad != Cout:
        w_t = jnp.pad(w_t, ((0, 0), (0, Cout_pad - Cout)))
        bias = jnp.pad(bias, ((0, Cout_pad - Cout),))
    # TODO(synk): K = C*(NH-1) is left unpadded — the block covers the full K
    # axis so it lowers fine, and realistic OFTNet configs have K % 128 == 0.
    return w_t, bias.reshape(1, -1)


# ----------------------------------------------------------------------------
# Full OFT forward (Pallas) and pure-JAX reference
# ----------------------------------------------------------------------------
def oft_forward(features, calib, corners_radar, weight, bias, scale=1):
    """features: (B,C,H,W); calib: (B,3,4); corners_radar: (1,NH,ND,NW,3);
    weight: (Cout, C*(NH-1)); bias: (Cout,).  Returns (B, Cout, NW-1, ND-1)."""
    tl, br, tr, bl, area, visible, (B, C, Hn, depth, width) = _oft_geometry(
        features, calib, corners_radar, scale)
    boxes = _prepare_boxes(tl, br, tr, bl, area, visible)    # (4, B*P, C*Hn)

    Cout = weight.shape[0]
    w_t, b_row = _pad_lanes(weight.T, bias)
    out_rows = _vox_project_pallas(boxes, w_t, b_row)[:, :Cout]
    ortho = out_rows.reshape(B, depth, width, Cout)
    return jnp.transpose(ortho, (0, 3, 2, 1))                # (B, Cout, width, depth)


def oft_forward_ref(features, calib, corners_radar, weight, bias, scale=1):
    """Pure-JAX mirror of the PyTorch forward (original op ordering)."""
    tl, br, tr, bl, area, visible, (B, C, Hn, depth, width) = _oft_geometry(
        features, calib, corners_radar, scale)
    vox = (tl + br - tr - bl) / area * visible               # (B,C,Hn,P)
    P = depth * width
    rows = jnp.transpose(vox, (0, 3, 1, 2)).reshape(B * P, C * Hn)
    z = jnp.dot(rows, weight.T, precision=lax.Precision.HIGHEST) + bias[None, :]
    out_rows = jnp.maximum(z, 0.0)
    ortho = out_rows.reshape(B, depth, width, -1)
    return jnp.transpose(ortho, (0, 3, 2, 1))


# ----------------------------------------------------------------------------
if __name__ == "__main__":
    key = jax.random.PRNGKey(0)
    k_feat, k_w, k_b = jax.random.split(key, 3)

    B, C, H, W = 2, 4, 16, 16        # feature map
    NH, ND, NW = 3, 5, 5             # corner grid (height, depth, width levels)
    Hn = NH - 1
    height_channels = C * Hn         # 8 -> nn.Linear(height_channels, channels)
    channels = 8

    features = jax.random.normal(k_feat, (B, C, H, W), dtype=jnp.float32)

    # Simple pinhole lidar->image calibration: u = fx*x/z + cx, v = fy*y/z + cy.
    calib_single = jnp.array([[10.0, 0.0, 8.0, 0.0],
                              [0.0, 10.0, 8.0, 0.0],
                              [0.0, 0.0, 1.0, 0.0]], dtype=jnp.float32)
    calib = jnp.broadcast_to(calib_single, (B, 3, 4))

    # Radar-frame voxel corner grid, (1, NH, ND, NW, 3) with coords (x, y, z),
    # all z > 0 so every corner projects in front of the camera.
    xs = jnp.linspace(-2.0, 2.0, NW)
    ys = jnp.linspace(-1.0, 1.0, NH)
    zs = jnp.linspace(3.0, 7.0, ND)
    yy, zz, xx = jnp.meshgrid(ys, zs, xs, indexing="ij")      # (NH, ND, NW)
    corners_radar = jnp.stack([xx, yy, zz], axis=-1)[None].astype(jnp.float32)

    weight = 0.1 * jax.random.normal(k_w, (channels, height_channels), jnp.float32)
    bias = 0.1 * jax.random.normal(k_b, (channels,), jnp.float32)

    out = oft_forward(features, calib, corners_radar, weight, bias)
    out = jax.block_until_ready(out)

    ref = oft_forward_ref(features, calib, corners_radar, weight, bias)
    assert out.shape == (B, channels, NW - 1, ND - 1), out.shape
    assert jnp.allclose(out, ref, atol=5e-3, rtol=5e-3)

    print("KERNEL_OK")
</pallas_src>

<mosaic_0001>
module attributes {stable_mosaic.version = 11 : i64} {
  func.func @_vox_project_kernel(%arg0: i32, %arg1: memref<4x16x8xf32, #tpu.memory_space<vmem>>, %arg2: memref<8x128xf32, #tpu.memory_space<vmem>>, %arg3: memref<1x128xf32, #tpu.memory_space<vmem>>, %arg4: memref<16x128xf32, #tpu.memory_space<vmem>>) attributes {dimension_semantics = [#tpu.dimension_semantics<parallel>], iteration_bounds = array<i64: 2>, scalar_prefetch = 0 : i64, scratch_operands = 0 : i64, tpu.core_type = #tpu.core_type<tc>, window_params = [{transform_indices = @transform_0, window_bounds = array<i64: 4, 16, 8>}, {pipeline_mode = #tpu.pipeline_mode<synchronous>, transform_indices = @transform_1, window_bounds = array<i64: 8, 128>}, {pipeline_mode = #tpu.pipeline_mode<synchronous>, transform_indices = @transform_2, window_bounds = array<i64: 1, 128>}, {transform_indices = @transform_3, window_bounds = array<i64: 16, 128>}]} {
    %c0 = arith.constant 0 : index
    %c0_0 = arith.constant 0 : index
    %c0_1 = arith.constant 0 : index
    %0 = vector.load %arg1[%c0, %c0_0, %c0_1] : memref<4x16x8xf32, #tpu.memory_space<vmem>>, vector<1x16x8xf32>
    %1 = vector.shape_cast %0 : vector<1x16x8xf32> to vector<16x8xf32>
    %c1 = arith.constant 1 : index
    %c0_2 = arith.constant 0 : index
    %c0_3 = arith.constant 0 : index
    %2 = vector.load %arg1[%c1, %c0_2, %c0_3] : memref<4x16x8xf32, #tpu.memory_space<vmem>>, vector<1x16x8xf32>
    %3 = vector.shape_cast %2 : vector<1x16x8xf32> to vector<16x8xf32>
    %4 = arith.subf %1, %3 : vector<16x8xf32>
    %c2 = arith.constant 2 : index
    %c0_4 = arith.constant 0 : index
    %c0_5 = arith.constant 0 : index
    %5 = vector.load %arg1[%c2, %c0_4, %c0_5] : memref<4x16x8xf32, #tpu.memory_space<vmem>>, vector<1x16x8xf32>
    %6 = vector.shape_cast %5 : vector<1x16x8xf32> to vector<16x8xf32>
    %c3 = arith.constant 3 : index
    %c0_6 = arith.constant 0 : index
    %c0_7 = arith.constant 0 : index
    %7 = vector.load %arg1[%c3, %c0_6, %c0_7] : memref<4x16x8xf32, #tpu.memory_space<vmem>>, vector<1x16x8xf32>
    %8 = vector.shape_cast %7 : vector<1x16x8xf32> to vector<16x8xf32>
    %9 = arith.subf %6, %8 : vector<16x8xf32>
    %10 = arith.addf %4, %9 : vector<16x8xf32>
    %c0_8 = arith.constant 0 : index
    %c0_9 = arith.constant 0 : index
    %11 = vector.load %arg2[%c0_8, %c0_9] : memref<8x128xf32, #tpu.memory_space<vmem>>, vector<8x128xf32>
    %cst = arith.constant dense<0.000000e+00> : vector<16x128xf32>
    %12 = tpu.matmul %10, %11, %cst {dimension_numbers = #tpu.dot_dimension_numbers<[1], [0], [0], [1], [0, 0, 1, 1], [], []>, precision = #tpu.contract_precision<fp32>} : vector<16x8xf32>, vector<8x128xf32>, vector<16x128xf32> -> vector<16x128xf32>
    %c0_10 = arith.constant 0 : index
    %c0_11 = arith.constant 0 : index
    %13 = vector.load %arg3[%c0_10, %c0_11] : memref<1x128xf32, #tpu.memory_space<vmem>>, vector<1x128xf32>
    %14 = vector.broadcast %13 : vector<1x128xf32> to vector<16x128xf32>
    %15 = arith.addf %12, %14 : vector<16x128xf32>
    %cst_12 = arith.constant 0.000000e+00 : f32
    %16 = vector.broadcast %cst_12 : f32 to vector<16x128xf32>
    %17 = arith.maximumf %15, %16 : vector<16x128xf32>
    %c0_13 = arith.constant 0 : index
    %c0_14 = arith.constant 0 : index
    %18 = vector.load %arg4[%c0_13, %c0_14] : memref<16x128xf32, #tpu.memory_space<vmem>>, vector<16x128xf32>
    tpu.vector_store %arg4[%c0_13, %c0_14], %17 {strides = array<i32>} : memref<16x128xf32, #tpu.memory_space<vmem>>, vector<16x128xf32>,
    return
  }
  func.func @transform_0(%arg0: i32) -> (i32, i32, i32) {
    %c0_i32 = arith.constant 0 : i32
    %c0_i32_0 = arith.constant 0 : i32
    %c0_i32_1 = arith.constant 0 : i32
    return %c0_i32, %arg0, %c0_i32_0 : i32, i32, i32
  }
  func.func @transform_1(%arg0: i32) -> (i32, i32) {
    %c0_i32 = arith.constant 0 : i32
    %c0_i32_0 = arith.constant 0 : i32
    %c0_i32_1 = arith.constant 0 : i32
    return %c0_i32, %c0_i32_0 : i32, i32
  }
  func.func @transform_2(%arg0: i32) -> (i32, i32) {
    %c0_i32 = arith.constant 0 : i32
    %c0_i32_0 = arith.constant 0 : i32
    %c0_i32_1 = arith.constant 0 : i32
    return %c0_i32, %c0_i32_0 : i32, i32
  }
  func.func @transform_3(%arg0: i32) -> (i32, i32) {
    %c0_i32 = arith.constant 0 : i32
    %c0_i32_0 = arith.constant 0 : i32
    return %arg0, %c0_i32 : i32, i32
  }
}

</mosaic_0001>

<bundles_post_ra>
// kernel: tpu_custom_call.1
= control target key start
LH: loop header
LB: loop body
LE: loop exit
PB: predicated region body
PF: predicated region fallthrough
CT: control target
= control target key end

     0   :  { %8 = vsyncpa [#allocation4], 0  ;;  %s1170_s0 = inlined_call_operand.vmem [shape: f32[4,32,8], index: 0, kind: input, shape index: {}]   ;;  %s1171_s1 = inlined_call_operand.vmem [shape: f32[8,128], index: 1, kind: input, shape index: {}]   ;;  %s1172_s2 = inlined_call_operand.vmem [shape: f32[1,128], index: 2, kind: input, shape index: {}]   ;;  %s1173_s3 = inlined_call_operand.hbm [shape: f32[32,128], index: 3, kind: output, shape index: {}]  }
   0x1   :  { %10 = vsyncpa [#allocation4 + $0x1], 0  ;;  %s1052_s12 = smov 0   ;;  %s1054_s13 = smov 0  }
   0x2   :  { %s1056_s14 = smov 0   ;;  %s1058_s15 = smov 0  }
   0x3 LB: > { %s840_s16 = sadd.s32 4294967295, %s1027_s15   ;;  %s841_s17 = sadd.s32 4294967294, %s1027_s15   ;;  %s1027_s15 = sphi %s1058_s15, %s1179_s15   ;;  %s1023_s14 = sphi %s1056_s14, %s1178_s14   ;;  %s1019_s13 = sphi %s1054_s13, %s1177_s13   ;;  %s1015_s12 = sphi %s1052_s12, %s1176_s12  }
   0x4   : > { %s1075_s18 = sadd.s32 1, %s1027_s15   ;;  %s23_s19 = sadd.s32 1, %s1023_s14 }
   0x5   : > { %s20_s20 = ssub.s32 %s1027_s15, %s1075_s18  ;;  %p30_p0 = scmp.ne.s32.totalorder %s1023_s14, %s1019_s13 }
   0x6   : > { %p21_p1 = scmp.eq.s32.totalorder %s20_s20, 0  ;;  %p31_p2 = scmp.eq.s32.totalorder %s1027_s15, 0 }
   0x7   : > { %p102_p3 = scmp.eq.s32.totalorder %s840_s16, 1  ;;  %p107_p4 = scmp.ne.s32.totalorder %s1019_s13, %s1015_s12 }
   0x8   : > { %s1088_s21 = scalar_select %p21_p1, %s1023_s14, %s23_s19  }
   0x9   : > { %p32_p5 = por %p31_p2, %p30_p0  ;;  %p1090_p6 = por %p102_p3, %p30_p0 }
   0xa   : > { %p108_p7 = scmp.eq.s32.totalorder %s841_s17, 1  ;;  %p843_p9 = scmp.ge.s32.totalorder %s1027_s15, 2 }
   0xc   : > { %p1094_p8 = por %p108_p7, %p107_p4  ;;  %130 = sbr.rel (%p843_p9) target bundleno = 27 (0x1b), region = 24 }
  0x13   : > { %133 = sbr.rel (!%p32_p5) target bundleno = 27 (0x1b), region = 28  ;;  %s135_s24 = sand.u32 (%p32_p5), 1, %s1023_s14  }
  0x14   : > { %s862_s25 = sshll.u32 (%p32_p5), %s1027_s15, 4  ;;  %s844_s26 = sshll.u32 (%p32_p5), %s135_s24, 6 }
  0x15   : > { %s140_s29 = scalar_lea.vmem (%p32_p5), %s1170_s0, %s862_s25  ;;  %s137_s30 = scalar_lea.vmem (%p32_p5), [#allocation2], %s844_s26 }
  0x16   : > { %v182_v0 = vld [vmem:[%s140_s29] sm:$0xff] (%p32_p5)  ;;  %v184_v1 = vld [vmem:[%s140_s29 + $0x8] sm:$0xff] (%p32_p5) }
  0x17   : > { %v186_v2 = vld [vmem:[%s140_s29 + $0x20] sm:$0xff] (%p32_p5)  ;;  %183 = vst [vmem:[%s137_s30] sm:$0xff] (%p32_p5), %v182_v0  ;;  %185 = vst [vmem:[%s137_s30 + $0x8] sm:$0xff] (%p32_p5), %v184_v1  ;;  %v188_v3 = vld [vmem:[%s140_s29 + $0x28] sm:$0xff] (%p32_p5) }
  0x18   : > { %187 = vst [vmem:[%s137_s30 + $0x10] sm:$0xff] (%p32_p5), %v186_v2  ;;  %v190_v4 = vld [vmem:[%s140_s29 + $0x40] sm:$0xff] (%p32_p5)  ;;  %v192_v5 = vld [vmem:[%s140_s29 + $0x48] sm:$0xff] (%p32_p5)  ;;  %189 = vst [vmem:[%s137_s30 + $0x18] sm:$0xff] (%p32_p5), %v188_v3 }
  0x19   : > { %191 = vst [vmem:[%s137_s30 + $0x20] sm:$0xff] (%p32_p5), %v190_v4  ;;  %193 = vst [vmem:[%s137_s30 + $0x28] sm:$0xff] (%p32_p5), %v192_v5  ;;  %v194_v6 = vld [vmem:[%s140_s29 + $0x60] sm:$0xff] (%p32_p5)  ;;  %v196_v7 = vld [vmem:[%s140_s29 + $0x68] sm:$0xff] (%p32_p5) }
  0x1a   : > { %195 = vst [vmem:[%s137_s30 + $0x30] sm:$0xff] %v194_v6  ;;  %197 = vst [vmem:[%s137_s30 + $0x38] sm:$0xff] %v196_v7 }
  0x1b PF: > { %p847_p10 = scmp.ge.s32.totalorder %s1027_s15, 1  ;;  %p202_p11 = scmp.lt.s32.totalorder %s1027_s15, 3 }
  0x1d   : > { %p203_p12 = pnand %p847_p10, %p202_p11 }
  0x1e   : > { %v251_v8 = vld [vmem:[%s1171_s1] sm:$0xff] (!%p203_p12)  ;;  %s1112_s6 = sand.u32 (!%p203_p12), 1, %s1019_s13   ;;  %vm259_vm0 = vcmask (!%p203_p12), 64512   ;;  %s863_s20 = sshll.u32 (!%p203_p12), %s840_s16, 8 }
  0x1f   : > { %206 = sbr.rel (%p203_p12) target bundleno = 302 (0x12e), region = 66  ;;  %v267_v9 = vand.u32 (!%p203_p12), 4294901760, %v251_v8  ;;  %s848_s7 = sshll.u32 (!%p203_p12), %s1112_s6, 6  ;;  %v856_v42 = vld [vmem:[%s1172_s2] ss:$0 sm:$0xff] (!%p203_p12) }
  0x20   : > { %s211_s8 = scalar_lea.vmem (!%p203_p12), [#allocation2], %s848_s7  ;;  %s849_s9 = sshll.u32 (!%p203_p12), %s1112_s6, 4 }
  0x21   : > { %897 = vmatprep.subr.mxu0 (!%p203_p12), %v267_v9  ;;  %v234_v10 = vld [vmem:[%s211_s8] sm:$0xff] (!%p203_p12)  ;;  %v235_v11 = vld [vmem:[%s211_s8 + $0x8] sm:$0xff] (!%p203_p12)  ;;  %v850_v12 = vld [vmem:[%s211_s8 + $0x10] sm:$0xff] (!%p203_p12)  ;;  %882 = vmatprep.subr.mxu1 (!%p203_p12), %v267_v9  ;;  %v354_v13 = vsub.f32 (!%p203_p12), %v251_v8, %v267_v9  ;;  %s231_s17 = scalar_lea.vmem (!%p203_p12), [#allocation3], %s849_s9  ;;  %s1126_s26 = scalar_lea.hbm (!%p203_p12), %s1173_s3, %s863_s20 }
  0x22   : > { %898 = vmatpush3.msra.mxu0 (!%p203_p12), %v267_v9  ;;  %v851_v14 = vld [vmem:[%s211_s8 + $0x18] sm:$0xff] (!%p203_p12)  ;;  %v239_v15 = vsub.f32 (!%p203_p12), %v234_v10, %v850_v12  ;;  %v852_v16 = vld [vmem:[%s211_s8 + $0x20] sm:$0xff] (!%p203_p12)  ;;  %v853_v17 = vld [vmem:[%s211_s8 + $0x28] sm:$0xff] (!%p203_p12)  ;;  %883 = vmatpush3.msra.mxu1 (!%p203_p12), %v267_v9  ;;  %s773_s19 = sshll.u32 (!%p203_p12), %s231_s17, 4  ;;  %s760_s27 = scalar_lea.sflag (!%p203_p12), [#allocation4], %s1112_s6  ;;  %s1121_s19 = int_to_ptr.vmem [resolvable:$true] %s773_s19 }
  0x23   : > { %v240_v18 = vsub.f32 (!%p203_p12), %v235_v11, %v851_v14  ;;  %v854_v19 = vld [vmem:[%s211_s8 + $0x30] sm:$0xff] (!%p203_p12)  ;;  %v855_v20 = vld [vmem:[%s211_s8 + $0x38] sm:$0xff] (!%p203_p12)  ;;  %v355_v21 = vand.u32 (!%p203_p12), 4294901760, %v354_v13  ;;  %s965_s28 = scalar_lea.vmem (!%p203_p12), %s1121_s19, 256  ;;  %s1029_s16 = smov (!%p203_p12), [#allocation3]  }
  0x24   : > { %v247_v22 = vsub.f32 (!%p203_p12), %v852_v16, %v854_v19  ;;  %v248_v23 = vsub.f32 (!%p203_p12), %v853_v17, %v855_v20  ;;  %p966_p13 = scmp.ne.s32.totalorder (!%p203_p12), %s1121_s19, %s965_s28  ;;  %s969_s29 = sshll.u32 (!%p203_p12), %s1029_s16, 4  ;;  %s970_s29 = int_to_ptr.vmem [resolvable:$false] %s969_s29 }
  0x25   : > { %v356_v24 = vsub.f32 (!%p203_p12), %v354_v13, %v355_v21  ;;  %902 = vmatprep.subr.mxu0 (!%p203_p12), %v355_v21  ;;  %s971_s30 = scalar_lea.vmem (!%p203_p12), %s970_s29, 512  ;;  %p972_p2 = scmp.lt.s32.totalorder (!%p203_p12), %s1121_s19, %s970_s29 }
  0x26   : > { %v249_v25 = vadd.f32 %v247_v22, %v239_v15  ;;  %v250_v26 = vadd.f32 %v248_v23, %v240_v18  ;;  %p967_p0 = pnand %p966_p13, %p1090_p6  ;;  %p973_p3 = scmp.lt.s32.totalorder %s971_s30, %s965_s28 }
  0x27   : > { %v357_v27 = vand.u32 4294901760, %v356_v24 }
  0x28   : > { %v261_v28 = vsel %vm259_vm0, %v249_v25, 0  ;;  %v264_v29 = vsel %vm259_vm0, %v250_v26, 0  ;;  %p968_p1 = pneg %p967_p0  ;;  %p974_p4 = por %p973_p3, %p972_p2 }
  0x29   : > { %v332_v30 = vand.u32 4294901760, %v261_v28  ;;  %v342_v31 = vand.u32 4294901760, %v264_v29  ;;  %887 = vmatprep.subr.mxu1 %v357_v27 }
  0x2a   : > { %p975_p5 = pnand %p974_p4, %p968_p1 }
  0x2b   : > { %v333_v32 = vsub.f32 %v261_v28, %v332_v30  ;;  %v343_v33 = vsub.f32 %v264_v29, %v342_v31 }
  0x2d   : > { %v334_v34 = vand.u32 4294901760, %v333_v32  ;;  %v344_v35 = vand.u32 4294901760, %v343_v33 }
  0x2f   : > { %899 = vmatprep.mubr.f32.mxu0 %v334_v34  ;;  %v335_v36 = vsub.f32 %v333_v32, %v334_v34  ;;  %v345_v37 = vsub.f32 %v343_v33, %v344_v35 }
  0x30   : > { %900 = vmatmul.mubr.f32.vlgmr.msra.gmra.mrb[0].mxu0 %v344_v35 }
  0x31   : > { %v336_v38 = vand.u32 4294901760, %v335_v36  ;;  %v346_v39 = vand.u32 4294901760, %v345_v37  ;;  %903 = vmatpush3.msra.mxu0 %v355_v21  ;;  %904 = vmatprep.mubr.f32.mxu0 %v332_v30 }
  0x32   : > { %907 = vmatprep.subr.mxu0 %v267_v9 }
  0x33   : > { %884 = vmatprep.mubr.f32.mxu1 %v336_v38 }
  0x34   : > { %885 = vmatmul.mubr.f32.vlgmr.msra.gmra.mrb[0].mxu1 %v346_v39 }
  0x35   : > { %888 = vmatpush3.msra.mxu1 %v357_v27  ;;  %889 = vmatprep.mubr.f32.mxu1 %v332_v30 }
  0x36   : > { %892 = vmatprep.subr.mxu1 %v354_v13 }
  0x38   : > { %905 = vmatmul.mubr.f32.vlgmr.msra.gmra.mrb[0].mxu0 %v342_v31 }
  0x39   : > { %908 = vmatpush3.msra.mxu0 %v267_v9  ;;  %909 = vmatprep.mubr.f32.mxu0 %v332_v30 }
  0x3c   : > { %890 = vmatmul.mubr.f32.vlgmr.msra.gmra.mrb[0].mxu1 %v342_v31 }
  0x3d   : > { %893 = vmatpush3.msra.mxu1 %v354_v13  ;;  %894 = vmatprep.mubr.f32.mxu1 %v333_v32 }
  0x40   : > { %910 = vmatmul.mubr.f32.vlgmr.msra.gmra.mrb[0].mxu0 %v342_v31 }
  0x44   : > { %895 = vmatmul.mubr.f32.vlgmr.msra.gmra.mrb[0].mxu1 %v343_v33 }
 0x113   : > { %v911_v40 = vpop.f32.mrb[0].mxu0 }
 0x114   : > { %v745_v41 = vpop.f32.mrb[1].mxu0 }
 0x117   : > { %v896_v43 = vpop.f32.mrb[0].mxu1 }
 0x118   : > { %v912_v44 = vadd.f32 %v896_v43, %v856_v42  ;;  %v504_v45 = vpop.f32.mrb[1].mxu1 }
 0x119   : > { %v914_v46 = vadd.f32 %v856_v42, %v504_v45 }
 0x11a   : > { %v913_v47 = vadd.f32 %v912_v44, %v911_v40 }
 0x11b   : > { %v915_v48 = vadd.f32 %v914_v46, %v745_v41 }
 0x11c   : > { %v756_v49 = vmax.f32 %v913_v47, 0.0 }
 0x11d   : > { %v755_v50 = vmax.f32 %v915_v48, 0.0 }
 0x11e   : > { %758 = vst [vmem:[%s231_s17 + $0x8] sm:$0xff] %v756_v49 }
 0x11f   : > { %757 = vst [vmem:[%s231_s17] sm:$0xff] %v755_v50 }
 0x120   : > { %978 = shalt.err (!%p975_p5)
}
 0x121   : > { %s979_s4 = scalar_lea.hbm %s1126_s26, 256  ;;  %s983_s8 = scalar_lea.hbm %s1173_s3, 512 }
 0x122   : > { %p980_p7 = scmp.ne.s32.totalorder %s1126_s26, %s979_s4  ;;  %p984_p12 = scmp.lt.u32.totalorder %s1126_s26, %s1173_s3 }
 0x123   : > { %p985_p13 = scmp.lt.u32.totalorder %s983_s8, %s979_s4  ;;  %p987_p1 = scmp.lt.u32.totalorder %s979_s4, %s1126_s26 }
 0x124   : > { %p981_p10 = pnand %p980_p7, %p1090_p6 }
 0x125   : > { %p986_p0 = por %p985_p13, %p984_p12 }
 0x126   : > { %p982_p11 = pneg %p981_p10 }
 0x127   : > { %p988_p2 = por %p987_p1, %p986_p0 }
 0x129   : > { %p989_p3 = pnand %p988_p2, %p982_p11 }
 0x12b   : > { %992 = shalt.err (!%p989_p3)
}
 0x12c   : > { %s1030_s11 = smov 128   ;;  %s1031_s17 = smov 8  }
 0x12d   : > { %924 = dma.vmem_to_hbm [thread:$0]  (%p1090_p6), %s1121_s19, 256, %s1126_s26, %s760_s27, %s1030_s11, %s1030_s11, %s1031_s17  }
 0x12e PF: > { %s788_s20 = sand.u32 1, %s1015_s12   ;;  %p927_p4 = pnand %p843_p9, %p1094_p8 }
 0x12f   : > { %s789_s24 = scalar_lea.sflag [#allocation4], %s788_s20 }
 0x130   : > { %1010 = dma.done.wait (!%p927_p4), %s789_s24, 256  }
 0x131   : > { %1012 = vsyncadd (!%p927_p4), %s789_s24, 4294967040  ;;  %p13_p5 = scmp.ge.s32.totalorder %s1075_s18, 4   ;;  %s1176_s12 = smov %s1019_s13 }
 0x132   : > { %s1177_s13 = smov %s1023_s14  ;;  %s1178_s14 = smov %s1088_s21 }
 0x133   : > { %s1179_s15 = smov %s1075_s18  ;;  %15 = sbr.rel (!%p13_p5) target bundleno = 3 (0x3), region = 113 }
 0x13a   :  { %794 = vsyncpa [#allocation4], 1 }
 0x13b   :  { %796 = vsyncpa [#allocation4 + $0x1], 1 }

</bundles_post_ra>
